<compile_context>
chip_gen: v7x
topology: tpu7x:2x2x1
jax: 0.10.0
libtpu: 0.0.40
codegen_flags: <defaults>
</compile_context>

<pallas_src>
import numpy as np

import jax
import jax.numpy as jnp
from jax import lax
from jax.experimental import pallas as pl
from jax.experimental.pallas import tpu as pltpu


def _node_kernel(inv_cnt_ref, x_ref, y_ref, o_ref):
    # x_ref / y_ref / o_ref: (H, W, BL) f32 tiles; lanes = batch*channel block.
    # inv_cnt_ref: (H, W, 1) f32, precomputed 1 / (valid 3x3 window size).
    x = x_ref[...]
    y = y_ref[...]
    inv_cnt = inv_cnt_ref[...]
    H, W, BL = x.shape

    neg_inf = jnp.float32(-jnp.inf)
    zero = jnp.float32(0.0)

    # ---- vertical stage (H axis, leading dim): shift via slice + concat ----
    def shift_up(a, fill):  # result[i] = a[i + 1]; last row = fill
        pad = jnp.full((1, W, BL), fill, a.dtype)
        return jnp.concatenate([a[1:], pad], axis=0)

    def shift_down(a, fill):  # result[i] = a[i - 1]; first row = fill
        pad = jnp.full((1, W, BL), fill, a.dtype)
        return jnp.concatenate([pad, a[:-1]], axis=0)

    vmax = jnp.maximum(x, jnp.maximum(shift_up(x, neg_inf),
                                      shift_down(x, neg_inf)))
    vsum = y + shift_up(y, zero) + shift_down(y, zero)

    # ---- horizontal stage (W axis, sublane dim): XLU roll + border masks ----
    col = lax.broadcasted_iota(jnp.int32, (H, W, 1), 1)
    is_first_col = col == 0
    is_last_col = col == W - 1

    # left neighbor: value at column j-1; right neighbor: value at column j+1
    left_m = jnp.where(is_first_col, neg_inf, pltpu.roll(vmax, shift=1, axis=1))
    right_m = jnp.where(is_last_col, neg_inf,
                        pltpu.roll(vmax, shift=W - 1, axis=1))
    mx = jnp.maximum(vmax, jnp.maximum(left_m, right_m))

    left_s = jnp.where(is_first_col, zero, pltpu.roll(vsum, shift=1, axis=1))
    right_s = jnp.where(is_last_col, zero,
                        pltpu.roll(vsum, shift=W - 1, axis=1))
    ssum = vsum + left_s + right_s

    # node output: maxpool(x) + avgpool(y)
    o_ref[...] = (mx + ssum * inv_cnt).astype(o_ref.dtype)


def node_forward(x, y):
    """x, y: (N, C, H, W) float32 (PyTorch NCHW). Returns (N, C, H, W)."""
    N, C, H, W = x.shape
    L = N * C

    # Relayout to (H, W, L): stencil runs over leading/sublane dims, the big
    # batch*channel axis sits on lanes (lane-dense loads/stores).
    xt = jnp.transpose(x.reshape(L, H, W), (1, 2, 0))
    yt = jnp.transpose(y.reshape(L, H, W), (1, 2, 0))

    # Lane block size: multiple of 128, budgeted so that 2 inputs + 1 output,
    # double-buffered, stay well under VMEM limits (incl. v7x's 64 MiB chip).
    lp = ((L + 127) // 128) * 128
    bytes_per_lane = H * W * 4
    cap = (12 * 1024 * 1024) // (6 * bytes_per_lane)
    cap = max(128, (cap // 128) * 128)
    bl = min(lp, cap, 1024)
    lp = ((lp + bl - 1) // bl) * bl  # make lane padding a multiple of bl

    pad_l = lp - L
    xt = jnp.pad(xt, ((0, 0), (0, 0), (0, pad_l)))
    yt = jnp.pad(yt, ((0, 0), (0, 0), (0, pad_l)))

    # Hoisted avg-pool denominator (count_include_pad=False): 1 / cnt(i, j),
    # depends only on spatial position. Computed once at trace time.
    ir = np.arange(H)
    ic = np.arange(W)
    rcnt = np.minimum(ir + 1, H - 1) - np.maximum(ir - 1, 0) + 1
    ccnt = np.minimum(ic + 1, W - 1) - np.maximum(ic - 1, 0) + 1
    inv_cnt = jnp.asarray(
        1.0 / (rcnt[:, None] * ccnt[None, :]), dtype=jnp.float32)[:, :, None]

    grid = (lp // bl,)
    out = pl.pallas_call(
        _node_kernel,
        out_shape=jax.ShapeDtypeStruct((H, W, lp), jnp.float32),
        grid=grid,
        in_specs=[
            pl.BlockSpec((H, W, 1), lambda i: (0, 0, 0)),   # inv_cnt (resident)
            pl.BlockSpec((H, W, bl), lambda i: (0, 0, i)),  # x
            pl.BlockSpec((H, W, bl), lambda i: (0, 0, i)),  # y
        ],
        out_specs=pl.BlockSpec((H, W, bl), lambda i: (0, 0, i)),
        compiler_params=pltpu.CompilerParams(
            dimension_semantics=("parallel",)),
    )(inv_cnt, xt, yt)

    out = out[:, :, :L]
    return jnp.transpose(out, (2, 0, 1)).reshape(N, C, H, W)


def _ref_forward(x, y):
    """Pure-JAX reference (matches PyTorch max/avg pool semantics)."""
    pad = [(0, 0), (0, 0), (1, 1), (1, 1)]
    mx = lax.reduce_window(x, -jnp.inf, lax.max,
                           (1, 1, 3, 3), (1, 1, 1, 1), pad)
    s = lax.reduce_window(y, 0.0, lax.add,
                          (1, 1, 3, 3), (1, 1, 1, 1), pad)
    cnt = lax.reduce_window(jnp.ones_like(y), 0.0, lax.add,
                            (1, 1, 3, 3), (1, 1, 1, 1), pad)
    return mx + s / cnt


if __name__ == "__main__":
    key = jax.random.PRNGKey(0)
    kx, ky = jax.random.split(key)
    N, C, H, W = 2, 4, 16, 16
    x = jax.random.normal(kx, (N, C, H, W), dtype=jnp.float32)
    y = jax.random.normal(ky, (N, C, H, W), dtype=jnp.float32)

    out = node_forward(x, y)
    out = jax.block_until_ready(out)

    ref = _ref_forward(x, y)
    assert out.shape == (N, C, H, W)
    assert jnp.allclose(out, ref, atol=1e-5, rtol=1e-5)

    print("KERNEL_OK")
</pallas_src>

<mosaic_0001>
module attributes {stable_mosaic.version = 11 : i64} {
  func.func @_node_kernel(%arg0: i32, %arg1: memref<16x16x1xf32, #tpu.memory_space<vmem>>, %arg2: memref<16x16x128xf32, #tpu.memory_space<vmem>>, %arg3: memref<16x16x128xf32, #tpu.memory_space<vmem>>, %arg4: memref<16x16x128xf32, #tpu.memory_space<vmem>>) attributes {dimension_semantics = [#tpu.dimension_semantics<parallel>], iteration_bounds = array<i64: 1>, scalar_prefetch = 0 : i64, scratch_operands = 0 : i64, tpu.core_type = #tpu.core_type<tc>, window_params = [{pipeline_mode = #tpu.pipeline_mode<synchronous>, transform_indices = @transform_0, window_bounds = array<i64: 16, 16, 1>}, {transform_indices = @transform_1, window_bounds = array<i64: 16, 16, 128>}, {transform_indices = @transform_2, window_bounds = array<i64: 16, 16, 128>}, {transform_indices = @transform_3, window_bounds = array<i64: 16, 16, 128>}]} {
    %c0 = arith.constant 0 : index
    %c0_0 = arith.constant 0 : index
    %c0_1 = arith.constant 0 : index
    %0 = vector.load %arg2[%c0, %c0_0, %c0_1] : memref<16x16x128xf32, #tpu.memory_space<vmem>>, vector<16x16x128xf32>
    %c0_2 = arith.constant 0 : index
    %c0_3 = arith.constant 0 : index
    %c0_4 = arith.constant 0 : index
    %1 = vector.load %arg3[%c0_2, %c0_3, %c0_4] : memref<16x16x128xf32, #tpu.memory_space<vmem>>, vector<16x16x128xf32>
    %c0_5 = arith.constant 0 : index
    %c0_6 = arith.constant 0 : index
    %c0_7 = arith.constant 0 : index
    %2 = vector.load %arg1[%c0_5, %c0_6, %c0_7] : memref<16x16x1xf32, #tpu.memory_space<vmem>>, vector<16x16x1xf32>
    %cst = arith.constant 0xFF800000 : f32
    %3 = vector.broadcast %cst : f32 to vector<1x16x128xf32>
    %4 = vector.extract_strided_slice %0 {offsets = [1, 0, 0], sizes = [15, 16, 128], strides = [1, 1, 1]} : vector<16x16x128xf32> to vector<15x16x128xf32>
    %5 = tpu.concatenate %4, %3 in 0 : vector<15x16x128xf32>, vector<1x16x128xf32> -> vector<16x16x128xf32>
    %cst_8 = arith.constant 0xFF800000 : f32
    %6 = vector.broadcast %cst_8 : f32 to vector<1x16x128xf32>
    %7 = vector.extract_strided_slice %0 {offsets = [0, 0, 0], sizes = [15, 16, 128], strides = [1, 1, 1]} : vector<16x16x128xf32> to vector<15x16x128xf32>
    %8 = tpu.concatenate %6, %7 in 0 : vector<1x16x128xf32>, vector<15x16x128xf32> -> vector<16x16x128xf32>
    %9 = arith.maximumf %5, %8 : vector<16x16x128xf32>
    %10 = arith.maximumf %0, %9 : vector<16x16x128xf32>
    %cst_9 = arith.constant 0.000000e+00 : f32
    %11 = vector.broadcast %cst_9 : f32 to vector<1x16x128xf32>
    %12 = vector.extract_strided_slice %1 {offsets = [1, 0, 0], sizes = [15, 16, 128], strides = [1, 1, 1]} : vector<16x16x128xf32> to vector<15x16x128xf32>
    %13 = tpu.concatenate %12, %11 in 0 : vector<15x16x128xf32>, vector<1x16x128xf32> -> vector<16x16x128xf32>
    %14 = arith.addf %1, %13 : vector<16x16x128xf32>
    %cst_10 = arith.constant 0.000000e+00 : f32
    %15 = vector.broadcast %cst_10 : f32 to vector<1x16x128xf32>
    %16 = vector.extract_strided_slice %1 {offsets = [0, 0, 0], sizes = [15, 16, 128], strides = [1, 1, 1]} : vector<16x16x128xf32> to vector<15x16x128xf32>
    %17 = tpu.concatenate %15, %16 in 0 : vector<1x16x128xf32>, vector<15x16x128xf32> -> vector<16x16x128xf32>
    %18 = arith.addf %14, %17 : vector<16x16x128xf32>
    %19 = tpu.iota {dimensions = array<i32: 1>} : vector<16x16x1xi32>
    %c0_i32 = arith.constant 0 : i32
    %20 = vector.broadcast %c0_i32 : i32 to vector<16x16x1xi32>
    %21 = arith.cmpi eq, %19, %20 : vector<16x16x1xi32>
    %c15_i32 = arith.constant 15 : i32
    %22 = vector.broadcast %c15_i32 : i32 to vector<16x16x1xi32>
    %23 = arith.cmpi eq, %19, %22 : vector<16x16x1xi32>
    %c1_i32 = arith.constant 1 : i32
    %24 = tpu.dynamic_rotate %10 by %c1_i32 dim 1 : vector<16x16x128xf32>, i32 -> vector<16x16x128xf32>
    %cst_11 = arith.constant 0xFF800000 : f32
    %25 = vector.shape_cast %21 : vector<16x16x1xi1> to vector<16x16x1xi1>
    %26 = vector.broadcast %25 : vector<16x16x1xi1> to vector<16x16x128xi1>
    %27 = vector.broadcast %cst_11 : f32 to vector<16x16x128xf32>
    %28 = arith.select %26, %27, %24 : vector<16x16x128xi1>, vector<16x16x128xf32>
    %c15_i32_12 = arith.constant 15 : i32
    %29 = tpu.dynamic_rotate %10 by %c15_i32_12 dim 1 : vector<16x16x128xf32>, i32 -> vector<16x16x128xf32>
    %cst_13 = arith.constant 0xFF800000 : f32
    %30 = vector.shape_cast %23 : vector<16x16x1xi1> to vector<16x16x1xi1>
    %31 = vector.broadcast %30 : vector<16x16x1xi1> to vector<16x16x128xi1>
    %32 = vector.broadcast %cst_13 : f32 to vector<16x16x128xf32>
    %33 = arith.select %31, %32, %29 : vector<16x16x128xi1>, vector<16x16x128xf32>
    %34 = arith.maximumf %28, %33 : vector<16x16x128xf32>
    %35 = arith.maximumf %10, %34 : vector<16x16x128xf32>
    %c1_i32_14 = arith.constant 1 : i32
    %36 = tpu.dynamic_rotate %18 by %c1_i32_14 dim 1 : vector<16x16x128xf32>, i32 -> vector<16x16x128xf32>
    %cst_15 = arith.constant 0.000000e+00 : f32
    %37 = vector.shape_cast %21 : vector<16x16x1xi1> to vector<16x16x1xi1>
    %38 = vector.broadcast %37 : vector<16x16x1xi1> to vector<16x16x128xi1>
    %39 = vector.broadcast %cst_15 : f32 to vector<16x16x128xf32>
    %40 = arith.select %38, %39, %36 : vector<16x16x128xi1>, vector<16x16x128xf32>
    %c15_i32_16 = arith.constant 15 : i32
    %41 = tpu.dynamic_rotate %18 by %c15_i32_16 dim 1 : vector<16x16x128xf32>, i32 -> vector<16x16x128xf32>
    %cst_17 = arith.constant 0.000000e+00 : f32
    %42 = vector.shape_cast %23 : vector<16x16x1xi1> to vector<16x16x1xi1>
    %43 = vector.broadcast %42 : vector<16x16x1xi1> to vector<16x16x128xi1>
    %44 = vector.broadcast %cst_17 : f32 to vector<16x16x128xf32>
    %45 = arith.select %43, %44, %41 : vector<16x16x128xi1>, vector<16x16x128xf32>
    %46 = arith.addf %18, %40 : vector<16x16x128xf32>
    %47 = arith.addf %46, %45 : vector<16x16x128xf32>
    %48 = vector.broadcast %2 : vector<16x16x1xf32> to vector<16x16x128xf32>
    %49 = arith.mulf %47, %48 : vector<16x16x128xf32>
    %50 = arith.addf %35, %49 : vector<16x16x128xf32>
    %c0_18 = arith.constant 0 : index
    %c0_19 = arith.constant 0 : index
    %c0_20 = arith.constant 0 : index
    %51 = vector.load %arg4[%c0_18, %c0_19, %c0_20] : memref<16x16x128xf32, #tpu.memory_space<vmem>>, vector<16x16x128xf32>
    tpu.vector_store %arg4[%c0_18, %c0_19, %c0_20], %50 {strides = array<i32>} : memref<16x16x128xf32, #tpu.memory_space<vmem>>, vector<16x16x128xf32>,
    return
  }
  func.func @transform_0(%arg0: i32) -> (i32, i32, i32) {
    %c0_i32 = arith.constant 0 : i32
    %c0_i32_0 = arith.constant 0 : i32
    %c0_i32_1 = arith.constant 0 : i32
    %c0_i32_2 = arith.constant 0 : i32
    return %c0_i32, %c0_i32_0, %c0_i32_1 : i32, i32, i32
  }
  func.func @transform_1(%arg0: i32) -> (i32, i32, i32) {
    %c0_i32 = arith.constant 0 : i32
    %c0_i32_0 = arith.constant 0 : i32
    %c0_i32_1 = arith.constant 0 : i32
    return %c0_i32, %c0_i32_0, %arg0 : i32, i32, i32
  }
  func.func @transform_2(%arg0: i32) -> (i32, i32, i32) {
    %c0_i32 = arith.constant 0 : i32
    %c0_i32_0 = arith.constant 0 : i32
    %c0_i32_1 = arith.constant 0 : i32
    return %c0_i32, %c0_i32_0, %arg0 : i32, i32, i32
  }
  func.func @transform_3(%arg0: i32) -> (i32, i32, i32) {
    %c0_i32 = arith.constant 0 : i32
    %c0_i32_0 = arith.constant 0 : i32
    %c0_i32_1 = arith.constant 0 : i32
    return %c0_i32, %c0_i32_0, %arg0 : i32, i32, i32
  }
}

</mosaic_0001>

<bundles_post_ra>
// kernel: tpu_custom_call.1
= control target key start
LH: loop header
LB: loop body
LE: loop exit
PB: predicated region body
PF: predicated region fallthrough
CT: control target
= control target key end

     0   :  { %8 = vsyncpa [#allocation3], 0  ;;  %s2544_s0 = inlined_call_operand.vmem [shape: f32[16,16,1], index: 0, kind: input, shape index: {}]   ;;  %s2545_s1 = inlined_call_operand.vmem [shape: f32[16,16,128], index: 1, kind: input, shape index: {}]   ;;  %s2546_s2 = inlined_call_operand.hbm [shape: f32[16,16,128], index: 2, kind: input, shape index: {}]   ;;  %s2547_s3 = inlined_call_operand.hbm [shape: f32[16,16,128], index: 3, kind: output, shape index: {}]  }
   0x1   :  { %9 = vsyncpa [#allocation4], 0  ;;  %s1106_s12 = smov [#allocation2]   ;;  %s1058_s16 = scalar_lea.hbm %s2546_s2, 4096 }
   0x2   :  { %s19_s13 = sshll.u32 %s1106_s12, 4  ;;  %p1059_p0 = scmp.ne.s32.totalorder %s2546_s2, %s1058_s16  ;;  %s20_s13 = int_to_ptr.vmem [resolvable:$true] %s19_s13 }
   0x3   :  { %p1062_p1 = scmp.lt.u32.totalorder %s1058_s16, %s2546_s2 }
   0x5   :  { %p1064_p2 = pnand %p1062_p1, %p1059_p0 }
   0x7   :  { %1067 = shalt.err (!%p1064_p2)
}
   0x8   :  { %s1068_s21 = scalar_lea.vmem %s20_s13, 4096  ;;  %p1073_p4 = scmp.lt.s32.totalorder %s20_s13, %s20_s13 }
   0x9   :  { %p1069_p3 = scmp.ne.s32.totalorder %s20_s13, %s1068_s21  ;;  %p1074_p5 = scmp.lt.s32.totalorder %s1068_s21, %s1068_s21 }
   0xb   :  { %p1075_p6 = por %p1074_p5, %p1073_p4 }
   0xd   :  { %p1076_p7 = pnand %p1075_p6, %p1069_p3 }
   0xf   :  { %1079 = shalt.err (!%p1076_p7)
}
  0x10   :  { %s1107_s22 = smov 128   ;;  %s1108_s23 = smov 8  }
  0x11   :  { %25 = dma.hbm_to_vmem [thread:$0]  %s2546_s2, 4096, %s20_s13, [#allocation3], %s1107_s22, %s1107_s22, %s1108_s23  }
  0x12   :  { %1102 = dma.done.wait [#allocation3], 4096  }
  0x13   :  { %1103 = vsyncadd [#allocation3], 4294963200  ;;  %v1109_v0 = vmov 0   ;;  %v95_v1 = vld [vmem:[%s2544_s0 + $0x10] sm:$0xff]  ;;  %v93_v2 = vld [vmem:[%s2544_s0] sm:$0xff]  ;;  %v249_v29 = vlaneseq }
  0x14   :  { %1057 = vset.pattern.permute.xlu1 %v1109_v0  ;;  %1056 = vset.pattern.permute.xlu0 %v1109_v0  ;;  %v96_v3 = vld [vmem:[%s2544_s0 + $0x18] sm:$0xff]  ;;  %v94_v4 = vld [vmem:[%s2544_s0 + $0x8] sm:$0xff]  ;;  %v97_v6 = vld [vmem:[%s2544_s0 + $0x20] sm:$0xff] }
  0x15   :  { %790 = vperm.xlu1 %1057, %v95_v1   ;;  %780 = vperm.xlu0 %1056, %v93_v2   ;;  %v98_v5 = vld [vmem:[%s2544_s0 + $0x28] sm:$0xff]  ;;  %v100_v7 = vld [vmem:[%s2544_s0 + $0x38] sm:$0xff]  ;;  %v99_v8 = vld [vmem:[%s2544_s0 + $0x30] sm:$0xff]  ;;  %v1250_v40 = vshrl.u32 %v249_v29, 7 }
  0x16   :  { %v102_v9 = vld [vmem:[%s2544_s0 + $0x48] sm:$0xff]  ;;  %v101_v10 = vld [vmem:[%s2544_s0 + $0x40] sm:$0xff]  ;;  %v104_v11 = vld [vmem:[%s2544_s0 + $0x58] sm:$0xff] }
  0x17   :  { %v103_v12 = vld [vmem:[%s2544_s0 + $0x50] sm:$0xff]  ;;  %v29_v13 = vld [vmem:[%s2545_s1] sm:$0xff]  ;;  %v30_v14 = vld [vmem:[%s2545_s1 + $0x8] sm:$0xff]  ;;  %vm288_vm0 = vcmp.lt.s32.totalorder %v1250_v40, 1  ;;  %vm389_vm1 = vcmp.lt.s32.totalorder %v1250_v40, 7  ;;  %vm252_vm2 = vcmp.eq.s32.totalorder %v1250_v40, 0 }
  0x18   :  { %v1191_v15 = vld [vmem:[%s2545_s1 + $0x20] sm:$0xff]  ;;  %v1196_v16 = vld [vmem:[%s2545_s1 + $0x28] sm:$0xff]  ;;  %v1198_v17 = vld [vmem:[#allocation2 + $0x10] sm:$0xff]  ;;  %v1316_v1 = vadd.s32 8, %v1250_v40 }
  0x19   :  { %795 = vperm.xlu1 %1057, %v96_v3   ;;  %785 = vperm.xlu0 %1056, %v94_v4   ;;  %v1200_v18 = vld [vmem:[#allocation2 + $0x18] sm:$0xff]  ;;  %v1202_v19 = vld [vmem:[#allocation2 + $0x20] sm:$0xff]  ;;  %v1204_v20 = vld [vmem:[#allocation2 + $0x28] sm:$0xff]  ;;  %v125_v22 = vmax.f32 %v1191_v15, %v29_v13  ;;  %v126_v23 = vmax.f32 %v1196_v16, %v30_v14 }
  0x1a   :  { %v1209_v21 = vld [vmem:[%s2545_s1 + $0x10] sm:$0xff]  ;;  %v106_v24 = vld [vmem:[%s2544_s0 + $0x68] sm:$0xff]  ;;  %v105_v25 = vld [vmem:[%s2544_s0 + $0x60] sm:$0xff]  ;;  %v187_v27 = vadd.f32 %v1202_v19, %v1198_v17  ;;  %v188_v28 = vadd.f32 %v1204_v20, %v1200_v18  ;;  %vm255_vm3 = vcmp.eq.s32.totalorder %v1316_v1, 15 }
  0x1b   :  { %v1222_v26 = vld [vmem:[%s2545_s1 + $0x18] sm:$0xff]  ;;  %v61_v30 = vld [vmem:[#allocation2] sm:$0xff]  ;;  %v62_v31 = vld [vmem:[#allocation2 + $0x8] sm:$0xff]  ;;  %v1229_v32 = vmax.f32 %v29_v13, %v1209_v21  ;;  %v1232_v33 = vmax.f32 %v1209_v21, %v125_v22 }
  0x1c   :  { %v1235_v34 = vmax.f32 %v1222_v26, %v126_v23  ;;  %v1238_v35 = vmax.f32 %v30_v14, %v1222_v26  ;;  %v108_v36 = vld [vmem:[%s2544_s0 + $0x78] sm:$0xff]  ;;  %v107_v37 = vld [vmem:[%s2544_s0 + $0x70] sm:$0xff]  ;;  %v1246_v38 = vadd.f32 %v187_v27, %v61_v30  ;;  %v1248_v39 = vadd.f32 %v188_v28, %v62_v31  ;;  %v110_v47 = vld [vmem:[%s2544_s0 + $0x88] sm:$0xff] }
  0x1d   :  { %805 = vperm.xlu1 %1057, %v98_v5   ;;  %800 = vperm.xlu0 %1056, %v97_v6   ;;  %v1253_v41 = vadd.f32 %v1198_v17, %v61_v30  ;;  %v1256_v42 = vadd.f32 %v1200_v18, %v62_v31  ;;  %v257_v43 = vrot.slane %v1232_v33, 7  ;;  %v256_v45 = vrot.slane %v1229_v32, 7  ;;  %v109_v48 = vld [vmem:[%s2544_s0 + $0x80] sm:$0xff]  ;;  %v1275_v51 = vld [vmem:[%s2545_s1 + $0x30] sm:$0xff]  ;;  %v1284_v56 = vld [vmem:[%s2545_s1 + $0x38] sm:$0xff] }
  0x1e   :  { %v273_v44 = vrot.slane %v1235_v34, 7  ;;  %v272_v46 = vrot.slane %v1238_v35, 7  ;;  %v523_v49 = vrot.slane %v1246_v38, 7  ;;  %v539_v50 = vrot.slane %v1248_v39, 7  ;;  %v112_v61 = vld [vmem:[%s2544_s0 + $0x98] sm:$0xff]  ;;  %v111_v62 = vld [vmem:[%s2544_s0 + $0x90] sm:$0xff] }
  0x1f   :  { %v358_v52 = vrot.slane %v1232_v33, 1  ;;  %v374_v53 = vrot.slane %v1235_v34, 1  ;;  %v522_v54 = vrot.slane %v1253_v41, 7  ;;  %v538_v55 = vrot.slane %v1256_v42, 7  ;;  %v1318_v2 = vld [vmem:[#allocation2 + $0x30] sm:$0xff]  ;;  %v1320_v3 = vld [vmem:[#allocation2 + $0x38] sm:$0xff] }
  0x20   :  { %v306_v57 = vsel %vm288_vm0, %v273_v44, %v257_v43  ;;  %v305_v58 = vsel %vm288_vm0, %v272_v46, %v256_v45  ;;  %v357_v59 = vrot.slane %v1229_v32, 1  ;;  %v373_v60 = vrot.slane %v1238_v35, 1  ;;  %v113_v14 = vld [vmem:[%s2544_s0 + $0xa0] sm:$0xff]  ;;  %v1356_v22 = vld [vmem:[%s2545_s1 + $0x50] sm:$0xff] }
  0x21   :  { %815 = vperm.xlu1 %1057, %v100_v7   ;;  %810 = vperm.xlu0 %1056, %v99_v8   ;;  %v571_v63 = vsel %vm288_vm0, %v539_v50, %v523_v49  ;;  %v127_v0 = vmax.f32 %v1275_v51, %v1209_v21  ;;  %v128_v4 = vmax.f32 %v1284_v56, %v1222_v26  ;;  %v327_v5 = vsel %vm252_vm2, -inf, %v306_v57  ;;  %v1351_v21 = vld [vmem:[%s2545_s1 + $0x40] sm:$0xff] }
  0x22   :  { %v391_v6 = vsel %vm389_vm1, %v358_v52, %v374_v53  ;;  %v325_v7 = vsel %vm252_vm2, -inf, %v305_v58  ;;  %v570_v8 = vsel %vm288_vm0, %v538_v55, %v522_v54  ;;  %v390_v13 = vsel %vm389_vm1, %v357_v59, %v373_v60  ;;  %v116_v58 = vld [vmem:[%s2544_s0 + $0xb8] sm:$0xff] }
  0x23   :  { %v618_v23 = vrot.slane %v1253_v41, 1  ;;  %v190_v26 = vadd.f32 %v1320_v3, %v1204_v20  ;;  %v1365_v27 = vmax.f32 %v1191_v15, %v127_v0  ;;  %v586_v28 = vsel %vm252_vm2, 0.0, %v570_v8 }
  0x24   :  { %v1371_v29 = vmax.f32 %v1196_v16, %v128_v4  ;;  %v460_v30 = vmax.f32 %v327_v5, %v391_v6  ;;  %v406_v8 = vsel %vm389_vm1, %v373_v60, %v357_v59 }
  0x25   :  { %825 = vperm.xlu1 %1057, %v102_v9   ;;  %820 = vperm.xlu0 %1056, %v101_v10   ;;  %v114_v9 = vld [vmem:[%s2544_s0 + $0xa8] sm:$0xff]  ;;  %v588_v10 = vsel %vm252_vm2, 0.0, %v571_v63  ;;  %v290_v63 = vsel %vm288_vm0, %v257_v43, %v273_v44  ;;  %v359_v4 = vrot.slane %v1365_v27, 1 }
  0x26   :  { %v716_v31 = vadd.f32 %v588_v10, %v1246_v38  ;;  %v375_v5 = vrot.slane %v1371_v29, 1  ;;  %v1419_v43 = vld [vmem:[%s2545_s1 + $0x48] sm:$0xff] }
  0x27   :  { %v118_v10 = vld [vmem:[%s2544_s0 + $0xc8] sm:$0xff] }
  0x28   :  { %v408_v59 = vsel %vm389_vm1, %v375_v5, %v359_v4 }
  0x29   :  { %835 = vperm.xlu1 %1057, %v104_v11   ;;  %830 = vperm.xlu0 %1056, %v103_v12   ;;  %v619_v11 = vrot.slane %v1246_v38, 1  ;;  %v635_v12 = vrot.slane %v1248_v39, 1 }
  0x2b   :  { %v651_v57 = vsel %vm389_vm1, %v619_v11, %v635_v12  ;;  %v667_v44 = vsel %vm389_vm1, %v635_v12, %v619_v11  ;;  %v1442_v11 = vld [vmem:[#allocation2 + $0x40] sm:$0xff] }
  0x2c   :  { %v1410_v6 = vadd.f32 %v716_v31, %v651_v57  ;;  %v427_v31 = vsel %vm255_vm3, -inf, %v406_v8 }
  0x2d   :  { %845 = vperm.xlu1 %1057, %v106_v24   ;;  %840 = vperm.xlu0 %1056, %v105_v25   ;;  %v634_v24 = vrot.slane %v1256_v42, 1  ;;  %v189_v25 = vadd.f32 %v1318_v2, %v1202_v19 }
  0x31   :  { %855 = vperm.xlu1 %1057, %v108_v36   ;;  %850 = vperm.xlu0 %1056, %v107_v37   ;;  %v458_v36 = vmax.f32 %v325_v7, %v390_v13  ;;  %v407_v37 = vsel %vm389_vm1, %v374_v53, %v358_v52  ;;  %v650_v52 = vsel %vm389_vm1, %v618_v23, %v634_v24  ;;  %v258_v7 = vrot.slane %v1365_v27, 7  ;;  %v117_v13 = vld [vmem:[%s2544_s0 + $0xc0] sm:$0xff] }
  0x32   :  { %v714_v53 = vadd.f32 %v586_v28, %v1253_v41  ;;  %v429_v0 = vsel %vm255_vm3, -inf, %v407_v37  ;;  %v120_v41 = vld [vmem:[%s2544_s0 + $0xd8] sm:$0xff] }
  0x34   :  { %v1438_v38 = vadd.f32 %v714_v53, %v650_v52 }
  0x35   :  { %865 = vperm.xlu1 %1057, %v110_v47   ;;  %860 = vperm.xlu0 %1056, %v109_v48   ;;  %v129_v47 = vmax.f32 %v1351_v21, %v1191_v15  ;;  %v131_v48 = vmax.f32 %v1356_v22, %v1275_v51  ;;  %v1392_v15 = vadd.f32 %v189_v25, %v1198_v17  ;;  %v1448_v25 = vld [vmem:[#allocation2 + $0x48] sm:$0xff] }
  0x36   :  { %v1408_v17 = vmax.f32 %v1232_v33, %v460_v30  ;;  %v555_v33 = vsel %vm288_vm0, %v523_v49, %v539_v50  ;;  %v289_v30 = vsel %vm288_vm0, %v256_v45, %v272_v46  ;;  %v191_v45 = vadd.f32 %v1442_v11, %v1318_v2  ;;  %v119_v46 = vld [vmem:[%s2544_s0 + $0xd0] sm:$0xff] }
  0x37   :  { %v524_v49 = vrot.slane %v1392_v15, 7  ;;  %v620_v60 = vrot.slane %v1392_v15, 1  ;;  %v717_v28 = vadd.f32 %v555_v33, %v1248_v39  ;;  %v459_v37 = vmax.f32 %v289_v30, %v427_v31 }
  0x39   :  { %875 = vperm.xlu1 %1057, %v112_v61   ;;  %870 = vperm.xlu0 %1056, %v111_v62   ;;  %v115_v61 = vld [vmem:[%s2544_s0 + $0xb0] sm:$0xff]  ;;  %v1395_v62 = vadd.f32 %v190_v26, %v1200_v18  ;;  %v1413_v18 = vmax.f32 %v1229_v32, %v458_v36  ;;  %v130_v26 = vmax.f32 %v1419_v43, %v1196_v16  ;;  %v685_v16 = vsel %vm255_vm3, 0.0, %v667_v44 }
  0x3a   :  { %v554_v36 = vsel %vm288_vm0, %v522_v54, %v538_v55  ;;  %v666_v32 = vsel %vm389_vm1, %v634_v24, %v618_v23  ;;  %v431_v55 = vsel %vm255_vm3, -inf, %v408_v59  ;;  %v192_v24 = vadd.f32 %v1448_v25, %v1320_v3 }
  0x3b   :  { %v540_v50 = vrot.slane %v1395_v62, 7  ;;  %v636_v12 = vrot.slane %v1395_v62, 1  ;;  %v715_v53 = vadd.f32 %v554_v36, %v1256_v42  ;;  %v122_v42 = vld [vmem:[%s2544_s0 + $0xe8] sm:$0xff] }
  0x3d   :  { %885 = vperm.xlu1 %1057, %v114_v9   ;;  %880 = vperm.xlu0 %1056, %v113_v14   ;;  %v274_v9 = vrot.slane %v1371_v29, 7  ;;  %v461_v14 = vmax.f32 %v290_v63, %v429_v0  ;;  %v556_v23 = vsel %vm288_vm0, %v524_v49, %v540_v50  ;;  %v668_v57 = vsel %vm389_vm1, %v636_v12, %v620_v60 }
  0x3e   :  { %v392_v0 = vsel %vm389_vm1, %v359_v4, %v375_v5  ;;  %v719_v44 = vadd.f32 %v556_v23, %v1395_v62  ;;  %v121_v4 = vld [vmem:[%s2544_s0 + $0xe0] sm:$0xff]  ;;  %v687_v5 = vsel %vm255_vm3, 0.0, %v668_v57  ;;  %v572_v8 = vsel %vm288_vm0, %v540_v50, %v524_v49  ;;  %v1540_v50 = vld [vmem:[#allocation2 + $0x50] sm:$0xff]  ;;  %v1600_v57 = vld [vmem:[#allocation2 + $0x68] sm:$0xff] }
  0x3f   :  { %v307_v39 = vsel %vm288_vm0, %v274_v9, %v258_v7  ;;  %v291_v54 = vsel %vm288_vm0, %v258_v7, %v274_v9  ;;  %v1498_v52 = vmax.f32 %v1235_v34, %v461_v14  ;;  %v1505_v7 = vadd.f32 %v717_v28, %v685_v16  ;;  %v1513_v34 = vld [vmem:[%s2545_s1 + $0x58] sm:$0xff] }
  0x40   :  { %v329_v63 = vsel %vm252_vm2, -inf, %v307_v39  ;;  %v463_v33 = vmax.f32 %v291_v54, %v431_v55  ;;  %v1526_v62 = vadd.f32 %v191_v45, %v1202_v19  ;;  %v1529_v9 = vadd.f32 %v192_v24, %v1204_v20  ;;  %v124_v20 = vld [vmem:[%s2544_s0 + $0xf8] sm:$0xff] }
  0x41   :  { %895 = vperm.xlu1 %1057, %v116_v58   ;;  %890 = vperm.xlu0 %1056, %v115_v61   ;;  %v1492_v58 = vmax.f32 %v1275_v51, %v129_v47  ;;  %v1495_v61 = vmax.f32 %v1284_v56, %v130_v26  ;;  %v683_v47 = vsel %vm255_vm3, 0.0, %v666_v32  ;;  %v132_v19 = vmax.f32 %v1513_v34, %v1284_v56  ;;  %v1559_v16 = vld [vmem:[#allocation2 + $0x58] sm:$0xff] }
  0x42   :  { %v1536_v26 = vadd.f32 %v715_v53, %v683_v47  ;;  %v1551_v30 = vmax.f32 %v1371_v29, %v463_v33  ;;  %v1553_v31 = vadd.f32 %v719_v44, %v687_v5  ;;  %v590_v36 = vsel %vm252_vm2, 0.0, %v572_v8  ;;  %v1568_v29 = vld [vmem:[%s2545_s1 + $0x60] sm:$0xff] }
  0x43   :  { %v360_v14 = vrot.slane %v1492_v58, 1  ;;  %v376_v59 = vrot.slane %v1495_v61, 1  ;;  %v259_v28 = vrot.slane %v1492_v58, 7  ;;  %v275_v49 = vrot.slane %v1495_v61, 7 }
  0x44   :  { %v652_v56 = vsel %vm389_vm1, %v620_v60, %v636_v12  ;;  %v525_v32 = vrot.slane %v1526_v62, 7  ;;  %v541_v39 = vrot.slane %v1529_v9, 7  ;;  %v621_v45 = vrot.slane %v1526_v62, 1 }
  0x45   :  { %905 = vperm.xlu1 %1057, %v118_v10   ;;  %900 = vperm.xlu0 %1056, %v117_v13   ;;  %v1532_v10 = vmax.f32 %v1238_v35, %v459_v37  ;;  %v462_v13 = vmax.f32 %v329_v63, %v392_v0  ;;  %v123_v35 = vld [vmem:[%s2544_s0 + $0xf0] sm:$0xff]  ;;  %v409_v12 = vsel %vm389_vm1, %v376_v59, %v360_v14 }
  0x46   :  { %v1584_v54 = vmax.f32 %v1351_v21, %v131_v48  ;;  %v193_v55 = vadd.f32 %v1540_v50, %v1442_v11  ;;  %v718_v23 = vadd.f32 %v590_v36, %v1392_v15  ;;  %v308_v24 = vsel %vm288_vm0, %v275_v49, %v259_v28  ;;  %v1598_v48 = vld [vmem:[#allocation2 + $0x60] sm:$0xff] }
  0x47   :  { %v1576_v60 = vmax.f32 %v1365_v27, %v462_v13  ;;  %v1592_v27 = vmax.f32 %v1419_v43, %v132_v19  ;;  %v194_v37 = vadd.f32 %v1559_v16, %v1448_v25  ;;  %v292_v51 = vsel %vm288_vm0, %v259_v28, %v275_v49 }
  0x48   :  { %v133_v15 = vmax.f32 %v1568_v29, %v1351_v21  ;;  %v433_v63 = vsel %vm255_vm3, -inf, %v409_v12  ;;  %v557_v0 = vsel %vm288_vm0, %v525_v32, %v541_v39  ;;  %v393_v33 = vsel %vm389_vm1, %v360_v14, %v376_v59 }
  0x49   :  { %915 = vperm.xlu1 %1057, %v120_v41   ;;  %910 = vperm.xlu0 %1056, %v119_v46   ;;  %v637_v41 = vrot.slane %v1529_v9, 1  ;;  %v1573_v46 = vld [vmem:[%s2545_s1 + $0x68] sm:$0xff]  ;;  %v331_v44 = vsel %vm252_vm2, -inf, %v308_v24  ;;  %v573_v21 = vsel %vm288_vm0, %v541_v39, %v525_v32  ;;  %v377_v5 = vrot.slane %v1592_v27, 1 }
  0x4a   :  { %v134_v53 = vmax.f32 %v1573_v46, %v1419_v43  ;;  %v1619_v43 = vadd.f32 %v193_v55, %v1318_v2  ;;  %v195_v8 = vadd.f32 %v1598_v48, %v1540_v50  ;;  %v196_v13 = vadd.f32 %v1600_v57, %v1559_v16 }
  0x4b   :  { %v669_v47 = vsel %vm389_vm1, %v637_v41, %v621_v45  ;;  %v1630_v14 = vadd.f32 %v718_v23, %v652_v56  ;;  %v465_v59 = vmax.f32 %v292_v51, %v433_v63  ;;  %v1633_v28 = vmax.f32 %v1356_v22, %v133_v15 }
  0x4c   :  { %v1636_v2 = vmax.f32 %v1513_v34, %v134_v53  ;;  %v592_v49 = vsel %vm252_vm2, 0.0, %v573_v21  ;;  %v260_v19 = vrot.slane %v1584_v54, 7  ;;  %v464_v36 = vmax.f32 %v331_v44, %v393_v33 }
  0x4d   :  { %925 = vperm.xlu1 %1057, %v122_v42   ;;  %920 = vperm.xlu0 %1056, %v121_v4   ;;  %v361_v42 = vrot.slane %v1584_v54, 1  ;;  %v1623_v4 = vadd.f32 %v194_v37, %v1320_v3  ;;  %v721_v3 = vadd.f32 %v557_v0, %v1529_v9  ;;  %v653_v56 = vsel %vm389_vm1, %v621_v45, %v637_v41 }
  0x4e   :  { %v526_v32 = vrot.slane %v1619_v43, 7  ;;  %v1652_v12 = vadd.f32 %v195_v8, %v1442_v11  ;;  %v1655_v55 = vadd.f32 %v196_v13, %v1448_v25  ;;  %v1658_v23 = vmax.f32 %v1495_v61, %v465_v59  ;;  %v1672_v25 = vld [vmem:[%s2545_s1 + $0x70] sm:$0xff]  ;;  %v1677_v61 = vld [vmem:[%s2545_s1 + $0x78] sm:$0xff] }
  0x4f   :  { %v410_v39 = vsel %vm389_vm1, %v377_v5, %v361_v42  ;;  %v542_v9 = vrot.slane %v1623_v4, 7  ;;  %v720_v24 = vadd.f32 %v592_v49, %v1526_v62  ;;  %v362_v45 = vrot.slane %v1633_v28, 1 }
  0x50   :  { %2548 = vst [vmem:[#allocation8_spill] sm:$0xff] %v1658_v23  ;;  %v378_v41 = vrot.slane %v1636_v2, 1  ;;  %v622_v11 = vrot.slane %v1619_v43, 1  ;;  %v638_v15 = vrot.slane %v1623_v4, 1  ;;  %v435_v62 = vsel %vm255_vm3, -inf, %v410_v39 }
  0x51   :  { %935 = vperm.xlu1 %1057, %v124_v20   ;;  %930 = vperm.xlu0 %1056, %v123_v35   ;;  %v276_v20 = vrot.slane %v1592_v27, 7  ;;  %v689_v35 = vsel %vm255_vm3, 0.0, %v669_v47  ;;  %v261_v63 = vrot.slane %v1633_v28, 7  ;;  %v277_v0 = vrot.slane %v1636_v2, 7 }
  0x52   :  { %v1663_v37 = vadd.f32 %v721_v3, %v689_v35  ;;  %v1686_v47 = vmax.f32 %v1492_v58, %v464_v36  ;;  %v574_v33 = vsel %vm288_vm0, %v542_v9, %v526_v32  ;;  %v527_v44 = vrot.slane %v1652_v12, 7  ;;  %v1706_v35 = vld [vmem:[#allocation2 + $0x70] sm:$0xff]  ;;  %v1708_v36 = vld [vmem:[#allocation2 + $0x78] sm:$0xff] }
  0x53   :  { %v293_v51 = vsel %vm288_vm0, %v260_v19, %v276_v20  ;;  %v309_v53 = vsel %vm288_vm0, %v276_v20, %v260_v19  ;;  %v543_v21 = vrot.slane %v1655_v55, 7  ;;  %v1692_v8 = vadd.f32 %v720_v24, %v653_v56 }
  0x54   :  { %2549 = vst [vmem:[#allocation9_spill] sm:$0xff] %v1686_v47  ;;  %v411_v13 = vsel %vm389_vm1, %v378_v41, %v362_v45  ;;  %v135_v59 = vmax.f32 %v1672_v25, %v1356_v22  ;;  %v136_v3 = vmax.f32 %v1677_v61, %v1513_v34  ;;  %v467_v58 = vmax.f32 %v293_v51, %v435_v62 }
  0x55   :  { %2550 = vst [vmem:[#allocation10_spill] sm:$0xff] %v1692_v8  ;;  %v558_v49 = vsel %vm288_vm0, %v526_v32, %v542_v9  ;;  %v333_v19 = vsel %vm252_vm2, -inf, %v309_v53  ;;  %v394_v20 = vsel %vm389_vm1, %v361_v42, %v377_v5  ;;  %v670_v22 = vsel %vm389_vm1, %v638_v15, %v622_v11 }
  0x56   :  { %v594_v34 = vsel %vm252_vm2, 0.0, %v574_v33  ;;  %v294_v56 = vsel %vm288_vm0, %v261_v63, %v277_v0  ;;  %v623_v32 = vrot.slane %v1652_v12, 1  ;;  %v437_v39 = vsel %vm255_vm3, -inf, %v411_v13 }
  0x57   :  { %v639_v42 = vrot.slane %v1655_v55, 1  ;;  %v310_v5 = vsel %vm288_vm0, %v277_v0, %v261_v63  ;;  %v575_v9 = vsel %vm288_vm0, %v543_v21, %v527_v44  ;;  %v1725_v24 = vmax.f32 %v1568_v29, %v135_v59 }
  0x58   :  { %v1728_v51 = vmax.f32 %v1573_v46, %v136_v3  ;;  %v197_v62 = vadd.f32 %v1706_v35, %v1598_v48  ;;  %v198_v53 = vadd.f32 %v1708_v36, %v1600_v57  ;;  %v691_v33 = vsel %vm255_vm3, 0.0, %v670_v22 }
  0x59   :  { %v723_v63 = vadd.f32 %v558_v49, %v1623_v4  ;;  %v466_v0 = vmax.f32 %v333_v19, %v394_v20  ;;  %v654_v13 = vsel %vm389_vm1, %v622_v11, %v638_v15  ;;  %v1740_v59 = vmax.f32 %v1592_v27, %v467_v58  ;;  %v1756_v27 = vld [vmem:[%s2545_s1 + $0x80] sm:$0xff] }
  0x5a   :  { %v722_v3 = vadd.f32 %v594_v34, %v1619_v43  ;;  %v559_v47 = vsel %vm288_vm0, %v527_v44, %v543_v21  ;;  %v335_v23 = vsel %vm252_vm2, -inf, %v310_v5  ;;  %v469_v8 = vmax.f32 %v294_v56, %v437_v39  ;;  %v1761_v43 = vld [vmem:[%s2545_s1 + $0x88] sm:$0xff]  ;;  %v1779_v34 = vld [vmem:[#allocation2 + $0x80] sm:$0xff] }
  0x5b   :  { %v671_v22 = vsel %vm389_vm1, %v639_v42, %v623_v32  ;;  %v395_v4 = vsel %vm389_vm1, %v362_v45, %v378_v41  ;;  %v596_v11 = vsel %vm252_vm2, 0.0, %v575_v9  ;;  %v1764_v15 = vadd.f32 %v197_v62, %v1540_v50  ;;  %v1790_v62 = vld [vmem:[#allocation2 + $0x88] sm:$0xff] }
  0x5c   :  { %v230_v44 = vadd.f32 %v198_v53, %v1559_v16  ;;  %v363_v45 = vrot.slane %v1725_v24, 1  ;;  %v379_v41 = vrot.slane %v1728_v51, 1  ;;  %v1769_v21 = vadd.f32 %v723_v63, %v691_v33  ;;  %v1816_v63 = vld [vmem:[%s2545_s1 + $0x90] sm:$0xff] }
  0x5d   :  { %v1772_v58 = vmax.f32 %v1584_v54, %v466_v0  ;;  %v262_v49 = vrot.slane %v1725_v24, 7  ;;  %v278_v19 = vrot.slane %v1728_v51, 7  ;;  %v1776_v20 = vadd.f32 %v722_v3, %v654_v13  ;;  %v1821_v0 = vld [vmem:[%s2545_s1 + $0x98] sm:$0xff] }
  0x5e   :  { %v725_v50 = vadd.f32 %v559_v47, %v1655_v55  ;;  %v137_v16 = vmax.f32 %v1756_v27, %v1568_v29  ;;  %v138_v56 = vmax.f32 %v1761_v43, %v1573_v46  ;;  %v693_v54 = vsel %vm255_vm3, 0.0, %v671_v22 }
  0x5f   :  { %2551 = vst [vmem:[#allocation11_spill] sm:$0xff] %v1772_v58  ;;  %v468_v39 = vmax.f32 %v335_v23, %v395_v4  ;;  %v655_v5 = vsel %vm389_vm1, %v623_v32, %v639_v42  ;;  %v724_v9 = vadd.f32 %v596_v11, %v1652_v12  ;;  %v1793_v55 = vmax.f32 %v1636_v2, %v469_v8 }
  0x60   :  { %v412_v29 = vsel %vm389_vm1, %v379_v41, %v363_v45  ;;  %v528_v47 = vrot.slane %v1764_v15, 7  ;;  %v544_v46 = vrot.slane %v230_v44, 7  ;;  %v624_v53 = vrot.slane %v1764_v15, 1 }
  0x61   :  { %2552 = vst [vmem:[#allocation12_spill] sm:$0xff] %v1793_v55  ;;  %v640_v33 = vrot.slane %v230_v44, 1  ;;  %v311_v23 = vsel %vm288_vm0, %v278_v19, %v262_v49  ;;  %v199_v12 = vadd.f32 %v1779_v34, %v1706_v35  ;;  %v1803_v32 = vadd.f32 %v725_v50, %v693_v54  ;;  %v1847_v54 = vld [vmem:[#allocation2 + $0x98] sm:$0xff] }
  0x62   :  { %v1806_v2 = vmax.f32 %v1672_v25, %v137_v16  ;;  %v1809_v8 = vmax.f32 %v1677_v61, %v138_v56  ;;  %v200_v42 = vadd.f32 %v1790_v62, %v1708_v36  ;;  %v1824_v13 = vmax.f32 %v1633_v28, %v468_v39 }
  0x63   :  { %2553 = vst [vmem:[#allocation13_spill] sm:$0xff] %v1803_v32  ;;  %v1826_v3 = vadd.f32 %v724_v9, %v655_v5  ;;  %v295_v22 = vsel %vm288_vm0, %v262_v49, %v278_v19  ;;  %v439_v4 = vsel %vm255_vm3, -inf, %v412_v29  ;;  %v560_v11 = vsel %vm288_vm0, %v528_v47, %v544_v46  ;;  %v1845_v19 = vld [vmem:[#allocation2 + $0x90] sm:$0xff] }
  0x64   :  { %2554 = vst [vmem:[#allocation14_spill] sm:$0xff] %v1824_v13  ;;  %v337_v50 = vsel %vm252_vm2, -inf, %v311_v23  ;;  %v396_v16 = vsel %vm389_vm1, %v363_v45, %v379_v41  ;;  %v576_v28 = vsel %vm288_vm0, %v544_v46, %v528_v47  ;;  %v672_v56 = vsel %vm389_vm1, %v640_v33, %v624_v53 }
  0x65   :  { %2555 = vst [vmem:[#allocation15_spill] sm:$0xff] %v1826_v3  ;;  %v1843_v49 = vadd.f32 %v199_v12, %v1598_v48  ;;  %v139_v39 = vmax.f32 %v1816_v63, %v1672_v25  ;;  %v140_v5 = vmax.f32 %v1821_v0, %v1677_v61  ;;  %v471_v45 = vmax.f32 %v295_v22, %v439_v4 }
  0x66   :  { %v232_v41 = vadd.f32 %v200_v42, %v1600_v57  ;;  %v364_v9 = vrot.slane %v1806_v2, 1  ;;  %v380_v29 = vrot.slane %v1809_v8, 1  ;;  %v727_v47 = vadd.f32 %v560_v11, %v230_v44 }
  0x67   :  { %v470_v48 = vmax.f32 %v337_v50, %v396_v16  ;;  %v263_v46 = vrot.slane %v1806_v2, 7  ;;  %v279_v23 = vrot.slane %v1809_v8, 7  ;;  %v695_v12 = vsel %vm255_vm3, 0.0, %v672_v56 }
  0x68   :  { %v598_v25 = vsel %vm252_vm2, 0.0, %v576_v28  ;;  %v201_v61 = vadd.f32 %v1845_v19, %v1779_v34  ;;  %v202_v57 = vadd.f32 %v1847_v54, %v1790_v62  ;;  %v656_v44 = vsel %vm389_vm1, %v624_v53, %v640_v33 }
  0x69   :  { %v529_v42 = vrot.slane %v1843_v49, 7  ;;  %v1870_v22 = vmax.f32 %v1756_v27, %v139_v39  ;;  %v1873_v4 = vmax.f32 %v1761_v43, %v140_v5  ;;  %v413_v11 = vsel %vm389_vm1, %v380_v29, %v364_v9 }
  0x6a   :  { %v545_v50 = vrot.slane %v232_v41, 7  ;;  %v625_v16 = vrot.slane %v1843_v49, 1  ;;  %v641_v28 = vrot.slane %v232_v41, 1  ;;  %v1879_v56 = vmax.f32 %v1728_v51, %v471_v45  ;;  %v1900_v51 = vld [vmem:[%s2545_s1 + $0xa0] sm:$0xff] }
  0x6b   :  { %v1881_v13 = vadd.f32 %v727_v47, %v695_v12  ;;  %v1884_v53 = vmax.f32 %v1725_v24, %v470_v48  ;;  %v312_v33 = vsel %vm288_vm0, %v279_v23, %v263_v46  ;;  %v726_v39 = vadd.f32 %v598_v25, %v1764_v15  ;;  %v1905_v24 = vld [vmem:[%s2545_s1 + $0xa8] sm:$0xff] }
  0x6c   :  { %2556 = vst [vmem:[#allocation16_spill] sm:$0xff] %v1879_v56  ;;  %v296_v5 = vsel %vm288_vm0, %v263_v46, %v279_v23  ;;  %v1892_v55 = vadd.f32 %v201_v61, %v1706_v35  ;;  %v1895_v3 = vadd.f32 %v202_v57, %v1708_v36  ;;  %v441_v15 = vsel %vm255_vm3, -inf, %v413_v11 }
  0x6d   :  { %2557 = vst [vmem:[#allocation17_spill] sm:$0xff] %v1881_v13  ;;  %2558 = vst [vmem:[#allocation18_spill] sm:$0xff] %v1884_v53  ;;  %v397_v35 = vsel %vm389_vm1, %v364_v9, %v380_v29  ;;  %v365_v45 = vrot.slane %v1870_v22, 1  ;;  %v381_v36 = vrot.slane %v1873_v4, 1  ;;  %v561_v47 = vsel %vm288_vm0, %v529_v42, %v545_v50  ;;  %v1931_v53 = vld [vmem:[#allocation2 + $0xa0] sm:$0xff]  ;;  %v1937_v13 = vld [vmem:[#allocation2 + $0xa8] sm:$0xff] }
  0x6e   :  { %v673_v48 = vsel %vm389_vm1, %v641_v28, %v625_v16  ;;  %v339_v46 = vsel %vm252_vm2, -inf, %v312_v33  ;;  %v577_v23 = vsel %vm288_vm0, %v545_v50, %v529_v42  ;;  %v264_v12 = vrot.slane %v1870_v22, 7 }
  0x6f   :  { %v280_v9 = vrot.slane %v1873_v4, 7  ;;  %v141_v29 = vmax.f32 %v1900_v51, %v1756_v27  ;;  %v142_v25 = vmax.f32 %v1905_v24, %v1761_v43  ;;  %v1927_v61 = vadd.f32 %v726_v39, %v656_v44 }
  0x70   :  { %v473_v57 = vmax.f32 %v296_v5, %v441_v15  ;;  %v530_v11 = vrot.slane %v1892_v55, 7  ;;  %v546_v33 = vrot.slane %v1895_v3, 7  ;;  %v697_v42 = vsel %vm255_vm3, 0.0, %v673_v48 }
  0x71   :  { %2559 = vst [vmem:[#allocation19_spill] sm:$0xff] %v1927_v61  ;;  %v729_v50 = vadd.f32 %v561_v47, %v232_v41  ;;  %v472_v56 = vmax.f32 %v339_v46, %v397_v35  ;;  %v414_v27 = vsel %vm389_vm1, %v381_v36, %v365_v45  ;;  %v600_v43 = vsel %vm252_vm2, 0.0, %v577_v23 }
  0x72   :  { %v657_v44 = vsel %vm389_vm1, %v625_v16, %v641_v28  ;;  %v626_v39 = vrot.slane %v1892_v55, 1  ;;  %v642_v5 = vrot.slane %v1895_v3, 1  ;;  %v313_v15 = vsel %vm288_vm0, %v280_v9, %v264_v12  ;;  %v1958_v16 = vld [vmem:[%s2545_s1 + $0xb0] sm:$0xff]  ;;  %v1963_v28 = vld [vmem:[%s2545_s1 + $0xb8] sm:$0xff] }
  0x73   :  { %v1948_v41 = vmax.f32 %v1816_v63, %v141_v29  ;;  %v1951_v35 = vmax.f32 %v1821_v0, %v142_v25  ;;  %v203_v47 = vadd.f32 %v1931_v53, %v1845_v19  ;;  %v297_v48 = vsel %vm288_vm0, %v264_v12, %v280_v9 }
  0x74   :  { %v443_v46 = vsel %vm255_vm3, -inf, %v414_v27  ;;  %v562_v23 = vsel %vm288_vm0, %v530_v11, %v546_v33  ;;  %v204_v29 = vadd.f32 %v1937_v13, %v1847_v54  ;;  %v1974_v25 = vmax.f32 %v1809_v8, %v473_v57 }
  0x75   :  { %v1976_v61 = vadd.f32 %v729_v50, %v697_v42  ;;  %v1979_v32 = vmax.f32 %v1806_v2, %v472_v56  ;;  %v398_v12 = vsel %vm389_vm1, %v365_v45, %v381_v36  ;;  %v674_v9 = vsel %vm389_vm1, %v642_v5, %v626_v39  ;;  %v1995_v45 = vld [vmem:[#allocation2 + $0xb0] sm:$0xff]  ;;  %v1997_v36 = vld [vmem:[#allocation2 + $0xb8] sm:$0xff] }
  0x76   :  { %2560 = vst [vmem:[#allocation20_spill] sm:$0xff] %v1974_v25  ;;  %v341_v27 = vsel %vm252_vm2, -inf, %v313_v15  ;;  %v143_v58 = vmax.f32 %v1958_v16, %v1816_v63  ;;  %v144_v8 = vmax.f32 %v1963_v28, %v1821_v0  ;;  %v728_v57 = vadd.f32 %v600_v43, %v1843_v49  ;;  %v2092_v25 = vld [vmem:[#allocation2 + $0xc8] sm:$0xff] }
  0x77   :  { %2561 = vst [vmem:[#allocation21_spill] sm:$0xff] %v1979_v32  ;;  %v475_v42 = vmax.f32 %v297_v48, %v443_v46  ;;  %v731_v2 = vadd.f32 %v562_v23, %v1895_v3  ;;  %v578_v56 = vsel %vm288_vm0, %v546_v33, %v530_v11  ;;  %v2000_v50 = vadd.f32 %v203_v47, %v1779_v34 }
  0x78   :  { %v236_v63 = vadd.f32 %v204_v29, %v1790_v62  ;;  %v366_v15 = vrot.slane %v1948_v41, 1  ;;  %v382_v0 = vrot.slane %v1951_v35, 1  ;;  %v699_v49 = vsel %vm255_vm3, 0.0, %v674_v9 }
  0x79   :  { %v474_v3 = vmax.f32 %v341_v27, %v398_v12  ;;  %v265_v43 = vrot.slane %v1948_v41, 7  ;;  %v281_v11 = vrot.slane %v1951_v35, 7  ;;  %v2010_v33 = vmax.f32 %v1900_v51, %v143_v58 }
  0x7a   :  { %v2013_v34 = vmax.f32 %v1905_v24, %v144_v8  ;;  %v205_v62 = vadd.f32 %v1995_v45, %v1931_v53  ;;  %v206_v47 = vadd.f32 %v1997_v36, %v1937_v13  ;;  %v2019_v48 = vadd.f32 %v728_v57, %v657_v44 }
  0x7b   :  { %v2022_v46 = vmax.f32 %v1873_v4, %v475_v42  ;;  %v602_v23 = vsel %vm252_vm2, 0.0, %v578_v56  ;;  %v658_v58 = vsel %vm389_vm1, %v626_v39, %v642_v5  ;;  %v2028_v29 = vadd.f32 %v731_v2, %v699_v49  ;;  %v2042_v39 = vld [vmem:[%s2545_s1 + $0xc0] sm:$0xff]  ;;  %v2055_v56 = vld [vmem:[%s2545_s1 + $0xc8] sm:$0xff] }
  0x7c   :  { %2562 = vst [vmem:[#allocation22_spill] sm:$0xff] %v2019_v48  ;;  %v415_v12 = vsel %vm389_vm1, %v382_v0, %v366_v15  ;;  %v531_v9 = vrot.slane %v2000_v50, 7  ;;  %v547_v27 = vrot.slane %v236_v63, 7  ;;  %v2034_v44 = vmax.f32 %v1870_v22, %v474_v3 }
  0x7d   :  { %2563 = vst [vmem:[#allocation23_spill] sm:$0xff] %v2022_v46  ;;  %2564 = vst [vmem:[#allocation24_spill] sm:$0xff] %v2028_v29  ;;  %v627_v4 = vrot.slane %v2000_v50, 1  ;;  %v643_v8 = vrot.slane %v236_v63, 1  ;;  %v314_v57 = vsel %vm288_vm0, %v281_v11, %v265_v43  ;;  %v2045_v5 = vadd.f32 %v205_v62, %v1845_v19 }
  0x7e   :  { %2565 = vst [vmem:[#allocation25_spill] sm:$0xff] %v2034_v44  ;;  %v2048_v42 = vadd.f32 %v206_v47, %v1847_v54  ;;  %v367_v22 = vrot.slane %v2010_v33, 1  ;;  %v383_v2 = vrot.slane %v2013_v34, 1  ;;  %v730_v49 = vadd.f32 %v602_v23, %v1892_v55 }
  0x7f   :  { %v298_v3 = vsel %vm288_vm0, %v265_v43, %v281_v11  ;;  %v445_v19 = vsel %vm255_vm3, -inf, %v415_v12  ;;  %v399_v54 = vsel %vm389_vm1, %v366_v15, %v382_v0  ;;  %v563_v62 = vsel %vm288_vm0, %v531_v9, %v547_v27 }
  0x80   :  { %v343_v47 = vsel %vm252_vm2, -inf, %v314_v57  ;;  %v579_v44 = vsel %vm288_vm0, %v547_v27, %v531_v9  ;;  %v145_v55 = vmax.f32 %v2042_v39, %v1900_v51  ;;  %v675_v43 = vsel %vm389_vm1, %v643_v8, %v627_v4 }
  0x81   :  { %v266_v11 = vrot.slane %v2010_v33, 7  ;;  %v282_v23 = vrot.slane %v2013_v34, 7  ;;  %v146_v15 = vmax.f32 %v2055_v56, %v1905_v24  ;;  %v477_v0 = vmax.f32 %v298_v3, %v445_v19  ;;  %v2090_v19 = vld [vmem:[#allocation2 + $0xc0] sm:$0xff] }
  0x82   :  { %v416_v12 = vsel %vm389_vm1, %v383_v2, %v367_v22  ;;  %v532_v57 = vrot.slane %v2045_v5, 7  ;;  %v548_v9 = vrot.slane %v2048_v42, 7  ;;  %v733_v27 = vadd.f32 %v563_v62, %v236_v63 }
  0x83   :  { %v604_v51 = vsel %vm252_vm2, 0.0, %v579_v44  ;;  %v628_v46 = vrot.slane %v2045_v5, 1  ;;  %v644_v29 = vrot.slane %v2048_v42, 1  ;;  %v2086_v32 = vadd.f32 %v730_v49, %v658_v58 }
  0x84   :  { %v701_v24 = vsel %vm255_vm3, 0.0, %v675_v43  ;;  %v476_v3 = vmax.f32 %v343_v47, %v399_v54  ;;  %v2095_v48 = vmax.f32 %v1958_v16, %v145_v55  ;;  %v299_v63 = vsel %vm288_vm0, %v266_v11, %v282_v23 }
  0x85   :  { %v447_v44 = vsel %vm255_vm3, -inf, %v416_v12  ;;  %v315_v58 = vsel %vm288_vm0, %v282_v23, %v266_v11  ;;  %v2104_v49 = vmax.f32 %v1963_v28, %v146_v15  ;;  %v2107_v54 = vmax.f32 %v1951_v35, %v477_v0 }
  0x86   :  { %v659_v62 = vsel %vm389_vm1, %v627_v4, %v643_v8  ;;  %v732_v47 = vadd.f32 %v604_v51, %v2000_v50  ;;  %v564_v55 = vsel %vm288_vm0, %v532_v57, %v548_v9  ;;  %v2114_v43 = vadd.f32 %v733_v27, %v701_v24 }
  0x87   :  { %v676_v12 = vsel %vm389_vm1, %v644_v29, %v628_v46  ;;  %v207_v11 = vadd.f32 %v2090_v19, %v1995_v45  ;;  %v208_v35 = vadd.f32 %v2092_v25, %v1997_v36  ;;  %v479_v23 = vmax.f32 %v299_v63, %v447_v44 }
  0x88   :  { %v345_v4 = vsel %vm252_vm2, -inf, %v315_v58  ;;  %v400_v50 = vsel %vm389_vm1, %v367_v22, %v383_v2  ;;  %v580_v8 = vsel %vm288_vm0, %v548_v9, %v532_v57  ;;  %v2129_v15 = vmax.f32 %v1948_v41, %v476_v3  ;;  %v2143_v41 = vld [vmem:[%s2545_s1 + $0xd0] sm:$0xff] }
  0x89   :  { %v735_v0 = vadd.f32 %v564_v55, %v2048_v42  ;;  %v368_v27 = vrot.slane %v2095_v48, 1  ;;  %v384_v51 = vrot.slane %v2104_v49, 1  ;;  %v2134_v24 = vadd.f32 %v732_v47, %v659_v62  ;;  %v2148_v42 = vld [vmem:[%s2545_s1 + $0xd8] sm:$0xff] }
  0x8a   :  { %2566 = vst [vmem:[#allocation26_spill] sm:$0xff] %v2129_v15  ;;  %v703_v63 = vsel %vm255_vm3, 0.0, %v676_v12  ;;  %v267_v44 = vrot.slane %v2095_v48, 7  ;;  %v283_v22 = vrot.slane %v2104_v49, 7  ;;  %v478_v9 = vmax.f32 %v345_v4, %v400_v50 }
  0x8b   :  { %v606_v3 = vsel %vm252_vm2, 0.0, %v580_v8  ;;  %v2153_v58 = vadd.f32 %v207_v11, %v1931_v53  ;;  %v2156_v62 = vadd.f32 %v208_v35, %v1937_v13  ;;  %v2161_v12 = vmax.f32 %v2013_v34, %v479_v23  ;;  %v2182_v11 = vld [vmem:[#allocation2 + $0xd8] sm:$0xff] }
  0x8c   :  { %v660_v15 = vsel %vm389_vm1, %v628_v46, %v644_v29  ;;  %v2165_v4 = vadd.f32 %v735_v0, %v703_v63  ;;  %v417_v50 = vsel %vm389_vm1, %v384_v51, %v368_v27  ;;  %v147_v53 = vmax.f32 %v2143_v41, %v1958_v16  ;;  %v2180_v29 = vld [vmem:[#allocation2 + $0xd0] sm:$0xff] }
  0x8d   :  { %v148_v13 = vmax.f32 %v2148_v42, %v1963_v28  ;;  %v734_v34 = vadd.f32 %v606_v3, %v2045_v5  ;;  %v2178_v46 = vsel %vm288_vm0, %v267_v44, %v283_v22  ;;  %v533_v16 = vrot.slane %v2153_v58, 7 }
  0x8e   :  { %v549_v28 = vrot.slane %v2156_v62, 7  ;;  %v449_v0 = vsel %vm255_vm3, -inf, %v417_v50  ;;  %v316_v63 = vsel %vm288_vm0, %v283_v22, %v267_v44  ;;  %v209_v3 = vadd.f32 %v2180_v29, %v2090_v19 }
  0x8f   :  { %v2209_v44 = vadd.f32 %v734_v34, %v660_v15  ;;  %v481_v15 = vmax.f32 %v2178_v46, %v449_v0  ;;  %v2244_v34 = vld [vmem:[%s2545_s1 + $0xe8] sm:$0xff] }
  0x94   :  { %v791_v2 = vpop.permute.xlu1 %790  ;;  %v781_v57 = vpop.permute.xlu0 %780 }
  0x95   :  { %v940_v47 = vmul.f32 %v791_v2, %v1410_v6  ;;  %v938_v55 = vmul.f32 %v781_v57, %v1438_v38  ;;  %v2195_v2 = vmax.f32 %v2042_v39, %v147_v53  ;;  %v2198_v57 = vmax.f32 %v2055_v56, %v148_v13 }
  0x96   :  { %v565_v53 = vsel %vm288_vm0, %v533_v16, %v549_v28  ;;  %v2215_v13 = vsel %vm252_vm2, -inf, %v316_v63 }
  0x97   :  { %v972_v6 = vadd.f32 %v940_v47, %v1408_v17  ;;  %v970_v38 = vadd.f32 %v938_v55, %v1413_v18  ;;  %v629_v17 = vrot.slane %v2153_v58, 1  ;;  %v645_v18 = vrot.slane %v2156_v62, 1 }
  0x98   :  { %v796_v35 = vpop.permute.xlu1 %795  ;;  %v786_v23 = vpop.permute.xlu0 %785  ;;  %v2207_v55 = vmax.f32 %v2010_v33, %v478_v9 }
  0x99   :  { %1004 = vst [vmem:[#allocation5 + $0x10] sm:$0xff] %v972_v6  ;;  %1002 = vst [vmem:[#allocation5] sm:$0xff] %v970_v38  ;;  %v941_v5 = vmul.f32 %v796_v35, %v1505_v7  ;;  %v939_v8 = vmul.f32 %v786_v23, %v1536_v26  ;;  %v210_v7 = vadd.f32 %v2182_v11, %v2092_v25  ;;  %v2231_v38 = vld [vmem:[%s2545_s1 + $0xe0] sm:$0xff]  ;;  %v268_v23 = vrot.slane %v2195_v2, 7 }
  0x9a   :  { %v2219_v6 = vsel %vm389_vm1, %v368_v27, %v384_v51  ;;  %v677_v9 = vsel %vm389_vm1, %v645_v18, %v629_v17  ;;  %v2234_v27 = vadd.f32 %v209_v3, %v1995_v45  ;;  %v284_v45 = vrot.slane %v2198_v57, 7 }
  0x9b   :  { %v973_v26 = vadd.f32 %v941_v5, %v1498_v52  ;;  %v971_v47 = vadd.f32 %v939_v8, %v1532_v10  ;;  %v581_v52 = vsel %vm288_vm0, %v549_v28, %v533_v16  ;;  %v2237_v51 = vadd.f32 %v210_v7, %v1997_v36 }
  0x9c   :  { %v806_v22 = vpop.permute.xlu1 %805  ;;  %v801_v50 = vpop.permute.xlu0 %800  ;;  %v705_v28 = vsel %vm255_vm3, 0.0, %v677_v9  ;;  %v737_v5 = vadd.f32 %v565_v53, %v2156_v62  ;;  %v480_v8 = vmax.f32 %v2215_v13, %v2219_v6  ;;  %v149_v0 = vmax.f32 %v2231_v38, %v2042_v39 }
  0x9d   :  { %1005 = vst [vmem:[#allocation5 + $0x18] sm:$0xff] %v973_v26  ;;  %1003 = vst [vmem:[#allocation5 + $0x8] sm:$0xff] %v971_v47  ;;  %v943_v10 = vmul.f32 %v806_v22, %v1553_v31  ;;  %v942_v33 = vmul.f32 %v801_v50, %v1630_v14  ;;  %v369_v31 = vrot.slane %v2195_v2, 1  ;;  %v385_v14 = vrot.slane %v2198_v57, 1  ;;  %v2568_v22 = vld [vmem:[#allocation8_spill] sm:$0xff] }
  0x9e   :  { %v608_v3 = vsel %vm252_vm2, 0.0, %v581_v52  ;;  %v150_v7 = vmax.f32 %v2244_v34, %v2055_v56  ;;  %v534_v26 = vrot.slane %v2234_v27, 7  ;;  %v550_v47 = vrot.slane %v2237_v51, 7 }
  0x9f   :  { %v975_v46 = vadd.f32 %v943_v10, %v1551_v30  ;;  %v974_v35 = vadd.f32 %v942_v33, %v1576_v60  ;;  %v2567_v60 = vld [vmem:[#allocation10_spill] sm:$0xff]  ;;  %v418_v62 = vsel %vm389_vm1, %v385_v14, %v369_v31  ;;  %v630_v39 = vrot.slane %v2234_v27, 1 }
  0xa0   :  { %v816_v16 = vpop.permute.xlu1 %815  ;;  %v811_v36 = vpop.permute.xlu0 %810  ;;  %v646_v13 = vrot.slane %v2237_v51, 1  ;;  %v317_v6 = vsel %vm288_vm0, %v284_v45, %v268_v23  ;;  %v2274_v10 = vmax.f32 %v2104_v49, %v481_v15  ;;  %v661_v33 = vsel %vm389_vm1, %v629_v17, %v645_v18  ;;  %v89_v15 = vld [vmem:[#allocation2 + $0xe0] sm:$0xff] }
  0xa1   :  { %1007 = vst [vmem:[#allocation5 + $0x28] sm:$0xff] %v975_v46  ;;  %1006 = vst [vmem:[#allocation5 + $0x20] sm:$0xff] %v974_v35  ;;  %v945_v30 = vmul.f32 %v816_v16, %v1663_v37  ;;  %v944_v63 = vmul.f32 %v811_v36, %v2567_v60  ;;  %v2569_v37 = vld [vmem:[#allocation9_spill] sm:$0xff]  ;;  %v736_v9 = vadd.f32 %v608_v3, %v2153_v58  ;;  %v451_v49 = vsel %vm255_vm3, -inf, %v418_v62 }
  0xa2   :  { %v2280_v46 = vmax.f32 %v2143_v41, %v149_v0  ;;  %v301_v36 = vsel %vm288_vm0, %v268_v23, %v284_v45  ;;  %v566_v58 = vsel %vm288_vm0, %v534_v26, %v550_v47  ;;  %v2292_v17 = vsel %vm252_vm2, -inf, %v317_v6  ;;  %v2570_v23 = vld [vmem:[#allocation11_spill] sm:$0xff] }
  0xa3   :  { %v977_v50 = vadd.f32 %v945_v30, %v2568_v22  ;;  %v976_v53 = vadd.f32 %v944_v63, %v2569_v37  ;;  %v90_v30 = vld [vmem:[#allocation2 + $0xe8] sm:$0xff]  ;;  %v678_v0 = vsel %vm389_vm1, %v646_v13, %v630_v39  ;;  %v582_v60 = vsel %vm288_vm0, %v550_v47, %v534_v26 }
  0xa4   :  { %v826_v52 = vpop.permute.xlu1 %825  ;;  %v821_v56 = vpop.permute.xlu0 %820  ;;  %v2307_v62 = vadd.f32 %v737_v5, %v705_v28  ;;  %v483_v22 = vmax.f32 %v301_v36, %v451_v49  ;;  %v2316_v6 = vadd.f32 %v736_v9, %v661_v33  ;;  %v707_v28 = vsel %vm255_vm3, 0.0, %v678_v0  ;;  %v91_v36 = vld [vmem:[#allocation2 + $0xf0] sm:$0xff] }
  0xa5   :  { %1009 = vst [vmem:[#allocation5 + $0x38] sm:$0xff] %v977_v50  ;;  %1008 = vst [vmem:[#allocation5 + $0x30] sm:$0xff] %v976_v53  ;;  %v947_v35 = vmul.f32 %v826_v52, %v1769_v21  ;;  %v946_v16 = vmul.f32 %v821_v56, %v1776_v20  ;;  %v2296_v21 = vsel %vm389_vm1, %v369_v31, %v385_v14  ;;  %v2572_v50 = vld [vmem:[#allocation15_spill] sm:$0xff]  ;;  %v610_v47 = vsel %vm252_vm2, 0.0, %v582_v60  ;;  %v2573_v52 = vld [vmem:[#allocation12_spill] sm:$0xff] }
  0xa6   :  { %v2299_v20 = vmax.f32 %v2148_v42, %v150_v7  ;;  %v211_v31 = vadd.f32 %v89_v15, %v2180_v29  ;;  %v212_v14 = vadd.f32 %v90_v30, %v2182_v11  ;;  %v2314_v53 = vmax.f32 %v2095_v48, %v480_v8  ;;  %v2332_v33 = vld [vmem:[%s2545_s1 + $0xf0] sm:$0xff]  ;;  %v2576_v60 = vld [vmem:[#allocation19_spill] sm:$0xff] }
  0xa7   :  { %v979_v18 = vadd.f32 %v947_v35, %v1740_v59  ;;  %v978_v45 = vadd.f32 %v946_v16, %v2570_v23  ;;  %v2571_v59 = vld [vmem:[#allocation13_spill] sm:$0xff]  ;;  %v739_v5 = vadd.f32 %v566_v58, %v2237_v51  ;;  %v482_v26 = vmax.f32 %v2292_v17, %v2296_v21  ;;  %v2574_v35 = vld [vmem:[#allocation14_spill] sm:$0xff]  ;;  %v2337_v51 = vld [vmem:[%s2545_s1 + $0xf8] sm:$0xff]  ;;  %s1110_s1 = smov [#allocation5]  }
  0xa8   :  { %v836_v63 = vpop.permute.xlu1 %835  ;;  %v831_v3 = vpop.permute.xlu0 %830  ;;  %v370_v48 = vrot.slane %v2280_v46, 1  ;;  %v386_v8 = vrot.slane %v2299_v20, 1  ;;  %v2340_v58 = vmax.f32 %v2198_v57, %v483_v22  ;;  %v662_v17 = vsel %vm389_vm1, %v630_v39, %v646_v13  ;;  %v92_v21 = vld [vmem:[#allocation2 + $0xf8] sm:$0xff]  ;;  %v2577_v39 = vld [vmem:[#allocation16_spill] sm:$0xff]  ;;  %s1039_s20 = sshll.u32 %s1110_s1, 4  ;;  %s1040_s20 = int_to_ptr.vmem [resolvable:$true] %s1039_s20 }
  0xa9   :  { %1011 = vst [vmem:[#allocation5 + $0x48] sm:$0xff] %v979_v18  ;;  %1010 = vst [vmem:[#allocation5 + $0x40] sm:$0xff] %v978_v45  ;;  %v949_v7 = vmul.f32 %v836_v63, %v2571_v59  ;;  %v948_v37 = vmul.f32 %v831_v3, %v2572_v50  ;;  %v2345_v18 = vadd.f32 %v211_v31, %v2090_v19  ;;  %v2575_v45 = vld [vmem:[#allocation17_spill] sm:$0xff]  ;;  %v269_v3 = vrot.slane %v2280_v46, 7  ;;  %v2578_v31 = vld [vmem:[#allocation18_spill] sm:$0xff]  ;;  %s1080_s21 = scalar_lea.vmem %s1040_s20, 4096  ;;  %p1085_p9 = scmp.lt.s32.totalorder %s1040_s20, %s1040_s20 }
  0xaa   :  { %v244_v23 = vadd.f32 %v212_v14, %v2092_v25  ;;  %v285_v57 = vrot.slane %v2299_v20, 7  ;;  %v738_v22 = vadd.f32 %v610_v47, %v2234_v27  ;;  %v2353_v59 = vadd.f32 %v91_v36, %v89_v15  ;;  %p1081_p8 = scmp.ne.s32.totalorder %s1040_s20, %s1080_s21  ;;  %p1086_p10 = scmp.lt.s32.totalorder %s1080_s21, %s1080_s21 }
  0xab   :  { %v981_v56 = vadd.f32 %v949_v7, %v2573_v52  ;;  %v980_v16 = vadd.f32 %v948_v37, %v2574_v35  ;;  %v151_v19 = vmax.f32 %v2332_v33, %v2143_v41  ;;  %v152_v25 = vmax.f32 %v2337_v51, %v2148_v42 }
  0xac   :  { %v846_v9 = vpop.permute.xlu1 %845  ;;  %v841_v49 = vpop.permute.xlu0 %840  ;;  %v2361_v7 = vadd.f32 %v92_v21, %v90_v30  ;;  %v419_v50 = vsel %vm389_vm1, %v386_v8, %v370_v48  ;;  %v535_v27 = vrot.slane %v2345_v18, 7  ;;  %v551_v15 = vrot.slane %v244_v23, 7  ;;  %p1087_p11 = por %p1086_p10, %p1085_p9 }
  0xad   :  { %1013 = vst [vmem:[#allocation5 + $0x58] sm:$0xff] %v981_v56  ;;  %1012 = vst [vmem:[#allocation5 + $0x50] sm:$0xff] %v980_v16  ;;  %v951_v0 = vmul.f32 %v846_v9, %v2575_v45  ;;  %v950_v63 = vmul.f32 %v841_v49, %v2576_v60  ;;  %v631_v47 = vrot.slane %v2345_v18, 1  ;;  %v647_v41 = vrot.slane %v244_v23, 1  ;;  %v2579_v56 = vld [vmem:[#allocation22_spill] sm:$0xff] }
  0xae   :  { %v2369_v16 = vadd.f32 %v739_v5, %v707_v28  ;;  %v302_v30 = vsel %vm288_vm0, %v269_v3, %v285_v57  ;;  %v453_v36 = vsel %vm255_vm3, -inf, %v419_v50  ;;  %v318_v9 = vsel %vm288_vm0, %v285_v57, %v269_v3  ;;  %v2583_v50 = vld [vmem:[#allocation23_spill] sm:$0xff]  ;;  %p1088_p12 = pnand %p1087_p11, %p1081_p8 }
  0xaf   :  { %v983_v13 = vadd.f32 %v951_v0, %v2577_v39  ;;  %v982_v14 = vadd.f32 %v950_v63, %v2578_v31  ;;  %v2378_v49 = vmax.f32 %v2231_v38, %v151_v19  ;;  %v2381_v21 = vmax.f32 %v2244_v34, %v152_v25  ;;  %v2581_v0 = vld [vmem:[#allocation21_spill] sm:$0xff] }
  0xb0   :  { %v856_v37 = vpop.permute.xlu1 %855  ;;  %v851_v52 = vpop.permute.xlu0 %850  ;;  %v2387_v5 = vadd.f32 %v2353_v59, %v2180_v29  ;;  %v2391_v60 = vadd.f32 %v2361_v7, %v2182_v11  ;;  %v2394_v57 = vmax.f32 %v2195_v2, %v482_v26  ;;  %v2396_v19 = vadd.f32 %v738_v22, %v662_v17  ;;  %v2582_v29 = vld [vmem:[#allocation24_spill] sm:$0xff] }
  0xb1   :  { %1015 = vst [vmem:[#allocation5 + $0x68] sm:$0xff] %v983_v13  ;;  %1014 = vst [vmem:[#allocation5 + $0x60] sm:$0xff] %v982_v14  ;;  %v953_v42 = vmul.f32 %v856_v37, %v1976_v61  ;;  %v952_v35 = vmul.f32 %v851_v52, %v2579_v56  ;;  %v2580_v61 = vld [vmem:[#allocation20_spill] sm:$0xff]  ;;  %v567_v25 = vsel %vm288_vm0, %v535_v27, %v551_v15  ;;  %v2406_v31 = vsel %vm252_vm2, -inf, %v318_v9  ;;  %v2584_v52 = vld [vmem:[#allocation25_spill] sm:$0xff] }
  0xb2   :  { %v679_v39 = vsel %vm389_vm1, %v647_v41, %v631_v47  ;;  %v583_v2 = vsel %vm288_vm0, %v551_v15, %v535_v27  ;;  %v485_v26 = vmax.f32 %v302_v30, %v453_v36  ;;  %v2412_v17 = vsel %vm389_vm1, %v370_v48, %v386_v8 }
  0xb3   :  { %v985_v45 = vadd.f32 %v953_v42, %v2580_v61  ;;  %v984_v28 = vadd.f32 %v952_v35, %v2581_v0  ;;  %v371_v22 = vrot.slane %v2378_v49, 1  ;;  %v387_v14 = vrot.slane %v2381_v21, 1 }
  0xb4   :  { %v866_v63 = vpop.permute.xlu1 %865  ;;  %v861_v3 = vpop.permute.xlu0 %860  ;;  %v536_v42 = vrot.slane %v2387_v5, 7  ;;  %v552_v56 = vrot.slane %v2391_v60, 7  ;;  %v709_v27 = vsel %vm255_vm3, 0.0, %v679_v39  ;;  %v741_v15 = vadd.f32 %v567_v25, %v244_v23 }
  0xb5   :  { %1017 = vst [vmem:[#allocation5 + $0x78] sm:$0xff] %v985_v45  ;;  %1016 = vst [vmem:[#allocation5 + $0x70] sm:$0xff] %v984_v28  ;;  %v955_v13 = vmul.f32 %v866_v63, %v2582_v29  ;;  %v954_v11 = vmul.f32 %v861_v3, %v2086_v32  ;;  %v612_v48 = vsel %vm252_vm2, 0.0, %v583_v2  ;;  %v663_v8 = vsel %vm389_vm1, %v631_v47, %v647_v41  ;;  %v2585_v63 = vld [vmem:[#allocation26_spill] sm:$0xff] }
  0xb6   :  { %v632_v61 = vrot.slane %v2387_v5, 1  ;;  %v648_v45 = vrot.slane %v2391_v60, 1  ;;  %v2431_v0 = vmax.f32 %v2299_v20, %v485_v26  ;;  %v484_v23 = vmax.f32 %v2406_v31, %v2412_v17 }
  0xb7   :  { %v987_v37 = vadd.f32 %v955_v13, %v2583_v50  ;;  %v986_v32 = vadd.f32 %v954_v11, %v2584_v52  ;;  %v270_v28 = vrot.slane %v2378_v49, 7  ;;  %v286_v47 = vrot.slane %v2381_v21, 7 }
  0xb8   :  { %v876_v35 = vpop.permute.xlu1 %875  ;;  %v871_v9 = vpop.permute.xlu0 %870  ;;  %v584_v3 = vsel %vm288_vm0, %v552_v56, %v536_v42  ;;  %v2443_v39 = vadd.f32 %v741_v15, %v709_v27  ;;  %v740_v29 = vadd.f32 %v612_v48, %v2345_v18  ;;  %v568_v13 = vsel %vm288_vm0, %v536_v42, %v552_v56 }
  0xb9   :  { %1019 = vst [vmem:[#allocation5 + $0x88] sm:$0xff] %v987_v37  ;;  %1018 = vst [vmem:[#allocation5 + $0x80] sm:$0xff] %v986_v32  ;;  %v957_v30 = vmul.f32 %v876_v35, %v2114_v43  ;;  %v956_v36 = vmul.f32 %v871_v9, %v2134_v24  ;;  %v420_v24 = vsel %vm389_vm1, %v387_v14, %v371_v22  ;;  %v537_v50 = vrot.slane %v2353_v59, 7 }
  0xba   :  { %v680_v2 = vsel %vm389_vm1, %v648_v45, %v632_v61  ;;  %v2458_v26 = vmax.f32 %v2337_v51, %v2244_v34  ;;  %v303_v18 = vsel %vm288_vm0, %v270_v28, %v286_v47  ;;  %v553_v34 = vrot.slane %v2361_v7, 7 }
  0xbb   :  { %v989_v41 = vadd.f32 %v957_v30, %v2107_v54  ;;  %v988_v43 = vadd.f32 %v956_v36, %v2585_v63  ;;  %v2450_v54 = vmax.f32 %v2332_v33, %v2231_v38  ;;  %v455_v38 = vsel %vm255_vm3, -inf, %v420_v24 }
  0xbc   :  { %v886_v25 = vpop.permute.xlu1 %885  ;;  %v881_v20 = vpop.permute.xlu0 %880  ;;  %v319_v33 = vsel %vm288_vm0, %v286_v47, %v270_v28  ;;  %v711_v52 = vsel %vm255_vm3, 0.0, %v680_v2  ;;  %v743_v32 = vadd.f32 %v568_v13, %v2391_v60  ;;  %v287_v35 = vrot.slane %v2458_v26, 7 }
  0xbd   :  { %1021 = vst [vmem:[#allocation5 + $0x98] sm:$0xff] %v989_v41  ;;  %1020 = vst [vmem:[#allocation5 + $0x90] sm:$0xff] %v988_v43  ;;  %v959_v11 = vmul.f32 %v886_v25, %v2165_v4  ;;  %v958_v31 = vmul.f32 %v881_v20, %v2209_v44  ;;  %v614_v4 = vsel %vm252_vm2, 0.0, %v584_v3  ;;  %v271_v42 = vrot.slane %v2450_v54, 7 }
  0xbe   :  { %v372_v56 = vrot.slane %v2450_v54, 1  ;;  %v388_v9 = vrot.slane %v2458_v26, 1  ;;  %v353_v27 = vsel %vm252_vm2, -inf, %v319_v33  ;;  %v404_v60 = vsel %vm389_vm1, %v371_v22, %v387_v14 }
  0xbf   :  { %v991_v44 = vadd.f32 %v959_v11, %v2161_v12  ;;  %v990_v17 = vadd.f32 %v958_v31, %v2207_v55  ;;  %v742_v15 = vadd.f32 %v614_v4, %v2387_v5  ;;  %v633_v48 = vrot.slane %v2353_v59, 1 }
  0xc0   :  { %v896_v51 = vpop.permute.xlu1 %895  ;;  %v891_v37 = vpop.permute.xlu0 %890  ;;  %v585_v36 = vsel %vm288_vm0, %v553_v34, %v537_v50  ;;  %v516_v41 = vmax.f32 %v2280_v46, %v484_v23  ;;  %v772_v63 = vadd.f32 %v740_v29, %v663_v8  ;;  %v487_v43 = vmax.f32 %v303_v18, %v455_v38 }
  0xc1   :  { %1023 = vst [vmem:[#allocation5 + $0xa8] sm:$0xff] %v991_v44  ;;  %1022 = vst [vmem:[#allocation5 + $0xa0] sm:$0xff] %v990_v17  ;;  %v961_v12 = vmul.f32 %v896_v51, %v2307_v62  ;;  %v960_v55 = vmul.f32 %v891_v37, %v2316_v6  ;;  %v649_v6 = vrot.slane %v2361_v7, 1  ;;  %v664_v5 = vsel %vm389_vm1, %v632_v61, %v648_v45 }
  0xc2   :  { %v421_v22 = vsel %vm389_vm1, %v388_v9, %v372_v56  ;;  %v320_v14 = vsel %vm288_vm0, %v287_v35, %v271_v42  ;;  %v775_v24 = vadd.f32 %v743_v32, %v711_v52  ;;  %v486_v3 = vmax.f32 %v353_v27, %v404_v60 }
  0xc3   :  { %v993_v30 = vadd.f32 %v961_v12, %v2274_v10  ;;  %v992_v62 = vadd.f32 %v960_v55, %v2314_v53  ;;  %v569_v46 = vsel %vm288_vm0, %v537_v50, %v553_v34  ;;  %v616_v8 = vsel %vm252_vm2, 0.0, %v585_v36 }
  0xc4   :  { %v906_v28 = vpop.permute.xlu1 %905  ;;  %v901_v47 = vpop.permute.xlu0 %900  ;;  %v774_v45 = vadd.f32 %v742_v15, %v664_v5  ;;  %v304_v20 = vsel %vm288_vm0, %v271_v42, %v287_v35  ;;  %v457_v29 = vsel %vm255_vm3, -inf, %v421_v22  ;;  %v355_v13 = vsel %vm252_vm2, -inf, %v320_v14 }
  0xc5   :  { %1025 = vst [vmem:[#allocation5 + $0xb8] sm:$0xff] %v993_v30  ;;  %1024 = vst [vmem:[#allocation5 + $0xb0] sm:$0xff] %v992_v62  ;;  %v963_v10 = vmul.f32 %v906_v28, %v2369_v16  ;;  %v962_v53 = vmul.f32 %v901_v47, %v2396_v19  ;;  %v681_v19 = vsel %vm389_vm1, %v649_v6, %v633_v48 }
  0xc6   :  { %v745_v31 = vadd.f32 %v569_v46, %v2361_v7  ;;  %v744_v2 = vadd.f32 %v616_v8, %v2353_v59  ;;  %v519_v18 = vmax.f32 %v2381_v21, %v487_v43  ;;  %v518_v38 = vmax.f32 %v2378_v49, %v486_v3 }
  0xc7   :  { %v995_v61 = vadd.f32 %v963_v10, %v2340_v58  ;;  %v994_v16 = vadd.f32 %v962_v53, %v2394_v57  ;;  %v405_v58 = vsel %vm389_vm1, %v372_v56, %v388_v9  ;;  %v713_v33 = vsel %vm255_vm3, 0.0, %v681_v19 }
  0xc8   :  { %v916_v23 = vpop.permute.xlu1 %915  ;;  %v911_v25 = vpop.permute.xlu0 %910  ;;  %v665_v4 = vsel %vm389_vm1, %v633_v48, %v649_v6  ;;  %v489_v50 = vmax.f32 %v304_v20, %v457_v29  ;;  %v777_v21 = vadd.f32 %v745_v31, %v713_v33 }
  0xc9   :  { %1027 = vst [vmem:[#allocation5 + $0xc8] sm:$0xff] %v995_v61  ;;  %1026 = vst [vmem:[#allocation5 + $0xc0] sm:$0xff] %v994_v16  ;;  %v965_v57 = vmul.f32 %v916_v23, %v2443_v39  ;;  %v964_v11 = vmul.f32 %v911_v25, %v772_v63  ;;  %v488_v39 = vmax.f32 %v355_v13, %v405_v58 }
  0xca   :  { %v776_v37 = vadd.f32 %v744_v2, %v665_v4  ;;  %v521_v1 = vmax.f32 %v2458_v26, %v489_v50 }
  0xcb   :  { %v997_v44 = vadd.f32 %v965_v57, %v2431_v0  ;;  %v996_v17 = vadd.f32 %v964_v11, %v516_v41  ;;  %v520_v40 = vmax.f32 %v2450_v54, %v488_v39 }
  0xcc   :  { %v926_v34 = vpop.permute.xlu1 %925  ;;  %v921_v51 = vpop.permute.xlu0 %920 }
  0xcd   :  { %1029 = vst [vmem:[#allocation5 + $0xd8] sm:$0xff] %v997_v44  ;;  %1028 = vst [vmem:[#allocation5 + $0xd0] sm:$0xff] %v996_v17  ;;  %v967_v59 = vmul.f32 %v926_v34, %v775_v24  ;;  %v966_v7 = vmul.f32 %v921_v51, %v774_v45 }
  0xcf   :  { %v999_v49 = vadd.f32 %v967_v59, %v519_v18  ;;  %v998_v52 = vadd.f32 %v966_v7, %v518_v38 }
  0xd0   :  { %v936_v32 = vpop.permute.xlu1 %935  ;;  %v931_v42 = vpop.permute.xlu0 %930 }
  0xd1   :  { %1031 = vst [vmem:[#allocation5 + $0xe8] sm:$0xff] %v999_v49  ;;  %1030 = vst [vmem:[#allocation5 + $0xe0] sm:$0xff] %v998_v52  ;;  %v969_v0 = vmul.f32 %v936_v32, %v777_v21  ;;  %v968_v56 = vmul.f32 %v931_v42, %v776_v37 }
  0xd3   :  { %v1001_v12 = vadd.f32 %v969_v0, %v521_v1  ;;  %v1000_v55 = vadd.f32 %v968_v56, %v520_v40 }
  0xd5   :  { %1033 = vst [vmem:[#allocation5 + $0xf8] sm:$0xff] %v1001_v12  ;;  %1032 = vst [vmem:[#allocation5 + $0xf0] sm:$0xff] %v1000_v55 }
  0xd6   :  { %1091 = shalt.err (!%p1088_p12)
}
  0xd7   :  { %s1092_s26 = scalar_lea.hbm %s2547_s3, 4096 }
  0xd8   :  { %p1093_p13 = scmp.ne.s32.totalorder %s2547_s3, %s1092_s26  ;;  %p1096_p0 = scmp.lt.u32.totalorder %s1092_s26, %s2547_s3 }
  0xda   :  { %p1098_p1 = pnand %p1096_p0, %p1093_p13 }
  0xdc   :  { %1101 = shalt.err (!%p1098_p1)
}
  0xdd   :  { %1045 = dma.vmem_to_hbm [thread:$0]  %s1040_s20, 4096, %s2547_s3, [#allocation4], %s1107_s22, %s1107_s22, %s1108_s23  }
  0xde   :  { %1104 = dma.done.wait [#allocation4], 4096  }
  0xdf   :  { %1105 = vsyncadd [#allocation4], 4294963200 }
  0xe0   :  { %1049 = vsyncpa [#allocation3], 1 }
  0xe1   :  { %1050 = vsyncpa [#allocation4], 1 }

</bundles_post_ra>
